<compile_context>
chip_gen: v5e
topology: v5e:2x2
jax: 0.10.0
libtpu: 0.0.40
codegen_flags: <defaults>
</compile_context>

<pallas_src>
import functools

import jax
import jax.numpy as jnp
from jax.experimental import pallas as pl
from jax.experimental.pallas import tpu as pltpu


def _attention_kernel(nb, g_ref, x_ref, wg_ref, wx_ref, bsum_ref, wp_ref,
                      bp_ref, o_ref):
    """One (batch-block, pixel-tile) grid step.

    g_ref: (NB, F_g, T), x_ref: (NB, F_l, T)   channel-major pixel tiles.
    wg_ref: (F_int, F_g), wx_ref: (F_int, F_l) folded conv+BN weights (io dtype).
    bsum_ref: (F_int, 1) f32  = b_g + b_x (folded).
    wp_ref:   (F_int, 1) f32 folded psi conv+BN weight.
    bp_ref:   (1,) f32 scalar in SMEM.
    o_ref:    (NB, F_l, T) lane-dense output tile.
    """
    wg = wg_ref[...]
    wx = wx_ref[...]
    bsum = bsum_ref[...]
    wp = wp_ref[...]
    bp = bp_ref[0]
    for b in range(nb):                       # NB is a small static constant
        g_blk = g_ref[b]                      # (F_g, T)
        x_blk = x_ref[b]                      # (F_l, T)
        g1 = jnp.dot(wg, g_blk, preferred_element_type=jnp.float32)
        x1 = jnp.dot(wx, x_blk, preferred_element_type=jnp.float32)
        h = jnp.maximum(g1 + x1 + bsum, 0.0)                 # (F_int, T) ReLU
        # psi: weighted sum over F_int.  An M=1 MXU matmul wastes 127/255 of
        # the MXU rows; do it as a VPU multiply + sublane (XLU) reduction.
        p = jnp.sum(wp * h, axis=0, keepdims=True) + bp      # (1, T)
        psi = jax.nn.sigmoid(p)                               # EUP
        o_ref[b] = (x_blk.astype(jnp.float32) * psi).astype(o_ref.dtype)


def _fold_bn(w, b, gamma, beta, mean, var, eps=1e-5):
    """Fold inference BatchNorm into a (C_out, C_in) weight + (C_out,) bias."""
    scale = gamma / jnp.sqrt(var + eps)
    w_f = w * scale[:, None]
    b_f = b * scale + (beta - mean * scale)
    return w_f, b_f


def _vmem_capacity_bytes():
    """Per-core VMEM capacity; conservative fallback if the query is unavailable."""
    try:
        cap = int(pltpu.get_tpu_info().vmem_capacity_bytes)
    except Exception:
        cap = 64 * 1024 * 1024          # v7x per-core size (smallest current chip)
    return min(max(cap, 32 * 1024 * 1024), 128 * 1024 * 1024)


def _plan_tiles(n, hw, fg, fl, fint, io_itemsize, tile_budget_bytes,
                target_lanes):
    """Pick (pixel_tile, batch_block, n_pixel_tiles) under a VMEM budget."""
    # Per-lane working set of one grid step (per batch sample):
    #   g/x inputs and the output are double-buffered by the pipeline,
    #   g1 / x1 / h / psi intermediates live in f32.
    per_lane = (2 * (fg + fl) * io_itemsize       # g, x   (double-buffered)
                + 2 * fl * io_itemsize            # out    (double-buffered)
                + 4 * (fint + 1) * 4)             # f32 intermediates (rough)
    max_lanes = max(128, tile_budget_bytes // per_lane)

    if hw <= min(target_lanes, max_lanes):
        pix_tile = hw                             # full extent: always legal
    else:
        pix_tile = min(target_lanes, max_lanes)
        pix_tile = max(128, (pix_tile // 128) * 128)
        # Prefer a tile that divides HW exactly (no ragged tail -> no masked
        # partial stores), but never shrink below half the chosen size.
        cand = pix_tile
        while cand >= max(128, pix_tile // 2):
            if hw % cand == 0:
                pix_tile = cand
                break
            cand -= 128

    n_pix = -(-hw // pix_tile)

    # If the whole spatial extent fits in one small tile, pack several batch
    # samples per grid step to amortize the per-step pipeline overhead, but
    # keep >= 2 grid steps so neither v7x TensorCore idles.
    nb = 1
    if n_pix == 1 and n > 1 and pix_tile < target_lanes:
        nb = min(n,
                 max(1, target_lanes // pix_tile),
                 max(1, max_lanes // pix_tile))
        nb = min(nb, max(1, n // 2))              # keep >= 2 batch grid steps
        nb = max(nb, 1)
    return pix_tile, nb, n_pix


def _weight_spec(shape, single_buffer):
    """BlockSpec for a constant-index (grid-invariant) weight/bias tile."""
    index_map = lambda nb, t: (0,) * len(shape)
    if single_buffer:
        # Constant index_map: double-buffering buys nothing; reclaim the VMEM.
        return pl.BlockSpec(shape, index_map, pipeline_mode=pl.Buffered(1))
    return pl.BlockSpec(shape, index_map)


def attention_block(g, x, params, *, pixel_tile_target=2048):
    """g: (N, F_g, H, W), x: (N, F_l, H, W) -> x * psi, shape/dtype of x.

    Activations travel HBM<->VMEM in their input dtype (pass bf16 to halve HBM
    traffic of this memory-bound op); MXU accumulation is always f32.
    """
    N, Fg, H, W = g.shape
    Nx, Fl, Hx, Wx = x.shape
    assert (N, H, W) == (Nx, Hx, Wx)
    Fint = params["wg"].shape[0]
    HW = H * W

    # ---- fold inference BatchNorm into the 1x1 conv weights/biases (f32) ----
    wg, bg = _fold_bn(params["wg"], params["bg"], params["bn_g_gamma"],
                      params["bn_g_beta"], params["bn_g_mean"], params["bn_g_var"])
    wx, bx = _fold_bn(params["wx"], params["bx"], params["bn_x_gamma"],
                      params["bn_x_beta"], params["bn_x_mean"], params["bn_x_var"])
    wp, bp = _fold_bn(params["wp"], params["bp"], params["bn_p_gamma"],
                      params["bn_p_beta"], params["bn_p_mean"], params["bn_p_var"])

    b_sum = (bg + bx).reshape(Fint, 1).astype(jnp.float32)   # relu sees the sum
    wp_col = wp.reshape(Fint, 1).astype(jnp.float32)
    bp_arr = bp.reshape(1).astype(jnp.float32)
    wg_io = wg.astype(g.dtype)          # matmul operands match activation dtype
    wx_io = wx.astype(x.dtype)          # (single-pass bf16 MXU on v6e/v7x)

    # ---- free reshape NCHW -> (N, C, HW); no pad, no transpose, no copies ----
    g3 = g.reshape(N, Fg, HW)
    x3 = x.reshape(N, Fl, HW)

    io_isz = max(jnp.dtype(g.dtype).itemsize, jnp.dtype(x.dtype).itemsize)
    vmem_cap = _vmem_capacity_bytes()
    tile_budget = int(0.40 * vmem_cap)           # pipelined working-set target
    vmem_limit = int(0.75 * vmem_cap)            # scoped-VMEM limit w/ headroom

    T, NB, n_pix = _plan_tiles(N, HW, Fg, Fl, Fint, io_isz, tile_budget,
                               pixel_tile_target)
    grid = (-(-N // NB), n_pix)                  # ragged tails masked by Pallas

    # Advisory cost: this op is HBM-bandwidth bound, not flop bound.
    g_isz = jnp.dtype(g.dtype).itemsize
    x_isz = jnp.dtype(x.dtype).itemsize
    cost = pl.CostEstimate(
        flops=2 * N * HW * Fint * (Fg + Fl + 1) + 6 * N * HW * Fint,
        transcendentals=N * HW,                                  # sigmoid
        bytes_accessed=N * HW * (Fg * g_isz + Fl * x_isz + Fl * x_isz),
    )

    kernel = functools.partial(_attention_kernel, NB)

    def _call(single_buffer_weights):
        grid_spec = pltpu.PrefetchScalarGridSpec(
            num_scalar_prefetch=0,
            grid=grid,
            in_specs=[
                pl.BlockSpec((NB, Fg, T), lambda n, t: (n, 0, t)),   # g
                pl.BlockSpec((NB, Fl, T), lambda n, t: (n, 0, t)),   # x
                _weight_spec((Fint, Fg), single_buffer_weights),     # W_g
                _weight_spec((Fint, Fl), single_buffer_weights),     # W_x
                _weight_spec((Fint, 1), single_buffer_weights),      # b_sum
                _weight_spec((Fint, 1), single_buffer_weights),      # W_psi
                pl.BlockSpec(memory_space=pltpu.MemorySpace.SMEM),   # b_psi
            ],
            out_specs=pl.BlockSpec((NB, Fl, T), lambda n, t: (n, 0, t)),
        )
        return pl.pallas_call(
            kernel,
            out_shape=jax.ShapeDtypeStruct((N, Fl, HW), x.dtype),
            grid_spec=grid_spec,
            compiler_params=pltpu.CompilerParams(
                dimension_semantics=("parallel", "parallel"),
                vmem_limit_bytes=vmem_limit),
            cost_estimate=cost,
        )(g3, x3, wg_io, wx_io, b_sum, wp_col, bp_arr)

    try:
        out3 = _call(True)       # single-buffer the constant-index weight tiles
    except Exception:
        # pipeline_mode=pl.Buffered(1) not accepted on this jax build; fall back
        # to default double-buffered weights (costs a few MiB VMEM, same math).
        out3 = _call(False)

    return out3.reshape(N, Fl, H, W)


def init_params(key, F_g, F_l, F_int):
    ks = jax.random.split(key, 9)
    p = {
        # 1x1 conv weights stored as (C_out, C_in); PyTorch stores
        # (C_out, C_in, 1, 1) — just drop the trailing spatial dims.
        "wg": jax.random.normal(ks[0], (F_int, F_g), jnp.float32) * 0.1,
        "bg": jax.random.normal(ks[1], (F_int,), jnp.float32) * 0.1,
        "wx": jax.random.normal(ks[2], (F_int, F_l), jnp.float32) * 0.1,
        "bx": jax.random.normal(ks[3], (F_int,), jnp.float32) * 0.1,
        "wp": jax.random.normal(ks[4], (1, F_int), jnp.float32) * 0.1,
        "bp": jax.random.normal(ks[5], (1,), jnp.float32) * 0.1,
        # BatchNorm (inference) parameters — deterministic, non-trivial.
        "bn_g_gamma": 1.0 + 0.1 * jax.random.normal(ks[6], (F_int,), jnp.float32),
        "bn_g_beta": jnp.full((F_int,), 0.05, jnp.float32),
        "bn_g_mean": jnp.full((F_int,), 0.02, jnp.float32),
        "bn_g_var": jnp.full((F_int,), 1.1, jnp.float32),
        "bn_x_gamma": 1.0 + 0.1 * jax.random.normal(ks[7], (F_int,), jnp.float32),
        "bn_x_beta": jnp.full((F_int,), -0.03, jnp.float32),
        "bn_x_mean": jnp.full((F_int,), -0.01, jnp.float32),
        "bn_x_var": jnp.full((F_int,), 0.9, jnp.float32),
        "bn_p_gamma": 1.0 + 0.1 * jax.random.normal(ks[8], (1,), jnp.float32),
        "bn_p_beta": jnp.full((1,), 0.01, jnp.float32),
        "bn_p_mean": jnp.full((1,), 0.0, jnp.float32),
        "bn_p_var": jnp.full((1,), 1.0, jnp.float32),
    }
    return p


def _reference(g, x, params):
    """Pure-JAX reference mirroring the PyTorch forward (inference BN)."""
    wg, bg = _fold_bn(params["wg"], params["bg"], params["bn_g_gamma"],
                      params["bn_g_beta"], params["bn_g_mean"], params["bn_g_var"])
    wx, bx = _fold_bn(params["wx"], params["bx"], params["bn_x_gamma"],
                      params["bn_x_beta"], params["bn_x_mean"], params["bn_x_var"])
    wp, bp = _fold_bn(params["wp"], params["bp"], params["bn_p_gamma"],
                      params["bn_p_beta"], params["bn_p_mean"], params["bn_p_var"])
    g1 = jnp.einsum("nchw,fc->nfhw", g, wg) + bg[None, :, None, None]
    x1 = jnp.einsum("nchw,fc->nfhw", x, wx) + bx[None, :, None, None]
    h = jnp.maximum(g1 + x1, 0.0)
    p = jnp.einsum("nfhw,of->nohw", h, wp) + bp[None, :, None, None]
    psi = jax.nn.sigmoid(p)
    return x * psi


if __name__ == "__main__":
    F_g, F_l, F_int = 4, 4, 8
    N, H, W = 2, 16, 16

    key = jax.random.PRNGKey(0)
    kg, kx, kp = jax.random.split(key, 3)
    g = jax.random.normal(kg, (N, F_g, H, W), jnp.float32)
    x = jax.random.normal(kx, (N, F_l, H, W), jnp.float32)
    params = init_params(kp, F_g, F_l, F_int)

    ref = _reference(g, x, params)

    # f32 activations (exact path)
    out = jax.block_until_ready(attention_block(g, x, params))
    assert out.shape == (N, F_l, H, W)
    assert jnp.allclose(out, ref, atol=1e-5, rtol=1e-5), "mismatch vs reference (f32)"

    # bf16 activations over HBM (halves memory traffic; f32 MXU accumulation)
    out_bf16 = jax.block_until_ready(
        attention_block(g.astype(jnp.bfloat16), x.astype(jnp.bfloat16), params))
    assert out_bf16.dtype == jnp.bfloat16
    assert jnp.allclose(out_bf16.astype(jnp.float32), ref, atol=6e-2, rtol=6e-2), \
        "mismatch vs reference (bf16)"

    print("KERNEL_OK")
</pallas_src>

<mosaic_0001>
module attributes {stable_mosaic.version = 11 : i64} {
  func.func @_attention_kernel(%arg0: i32, %arg1: i32, %arg2: memref<1x4x256xf32, #tpu.memory_space<vmem>>, %arg3: memref<1x4x256xf32, #tpu.memory_space<vmem>>, %arg4: memref<8x4xf32, #tpu.memory_space<vmem>>, %arg5: memref<8x4xf32, #tpu.memory_space<vmem>>, %arg6: memref<8x1xf32, #tpu.memory_space<vmem>>, %arg7: memref<8x1xf32, #tpu.memory_space<vmem>>, %arg8: memref<1xf32, #tpu.memory_space<smem>>, %arg9: memref<1x4x256xf32, #tpu.memory_space<vmem>>) attributes {dimension_semantics = [#tpu.dimension_semantics<parallel>, #tpu.dimension_semantics<parallel>], iteration_bounds = array<i64: 2, 1>, scalar_prefetch = 0 : i64, scratch_operands = 0 : i64, tpu.core_type = #tpu.core_type<tc>, window_params = [{transform_indices = @transform_0, window_bounds = array<i64: 1, 4, 256>}, {transform_indices = @transform_1, window_bounds = array<i64: 1, 4, 256>}, {pipeline_mode = #tpu.pipeline_mode<synchronous>, transform_indices = @transform_2, window_bounds = array<i64: 8, 4>}, {pipeline_mode = #tpu.pipeline_mode<synchronous>, transform_indices = @transform_3, window_bounds = array<i64: 8, 4>}, {pipeline_mode = #tpu.pipeline_mode<synchronous>, transform_indices = @transform_4, window_bounds = array<i64: 8, 1>}, {pipeline_mode = #tpu.pipeline_mode<synchronous>, transform_indices = @transform_5, window_bounds = array<i64: 8, 1>}, {transform_indices = @transform_6, window_bounds = array<i64: 1>}, {transform_indices = @transform_7, window_bounds = array<i64: 1, 4, 256>}]} {
    %c0 = arith.constant 0 : index
    %c0_0 = arith.constant 0 : index
    %0 = vector.load %arg4[%c0, %c0_0] : memref<8x4xf32, #tpu.memory_space<vmem>>, vector<8x4xf32>
    %c0_1 = arith.constant 0 : index
    %c0_2 = arith.constant 0 : index
    %1 = vector.load %arg5[%c0_1, %c0_2] : memref<8x4xf32, #tpu.memory_space<vmem>>, vector<8x4xf32>
    %c0_3 = arith.constant 0 : index
    %c0_4 = arith.constant 0 : index
    %2 = vector.load %arg6[%c0_3, %c0_4] : memref<8x1xf32, #tpu.memory_space<vmem>>, vector<8x1xf32>
    %c0_5 = arith.constant 0 : index
    %c0_6 = arith.constant 0 : index
    %3 = vector.load %arg7[%c0_5, %c0_6] : memref<8x1xf32, #tpu.memory_space<vmem>>, vector<8x1xf32>
    %c0_7 = arith.constant 0 : index
    %4 = memref.load %arg8[%c0_7] : memref<1xf32, #tpu.memory_space<smem>>
    %c0_8 = arith.constant 0 : index
    %c0_9 = arith.constant 0 : index
    %c0_10 = arith.constant 0 : index
    %5 = vector.load %arg2[%c0_8, %c0_9, %c0_10] : memref<1x4x256xf32, #tpu.memory_space<vmem>>, vector<1x4x256xf32>
    %6 = vector.shape_cast %5 : vector<1x4x256xf32> to vector<4x256xf32>
    %c0_11 = arith.constant 0 : index
    %c0_12 = arith.constant 0 : index
    %c0_13 = arith.constant 0 : index
    %7 = vector.load %arg3[%c0_11, %c0_12, %c0_13] : memref<1x4x256xf32, #tpu.memory_space<vmem>>, vector<1x4x256xf32>
    %8 = vector.shape_cast %7 : vector<1x4x256xf32> to vector<4x256xf32>
    %cst = arith.constant dense<0.000000e+00> : vector<8x256xf32>
    %9 = tpu.matmul %0, %6, %cst {dimension_numbers = #tpu.dot_dimension_numbers<[1], [0], [0], [1], [0, 0, 1, 1], [], []>} : vector<8x4xf32>, vector<4x256xf32>, vector<8x256xf32> -> vector<8x256xf32>
    %cst_14 = arith.constant dense<0.000000e+00> : vector<8x256xf32>
    %10 = tpu.matmul %1, %8, %cst_14 {dimension_numbers = #tpu.dot_dimension_numbers<[1], [0], [0], [1], [0, 0, 1, 1], [], []>} : vector<8x4xf32>, vector<4x256xf32>, vector<8x256xf32> -> vector<8x256xf32>
    %11 = arith.addf %9, %10 : vector<8x256xf32>
    %12 = vector.broadcast %2 : vector<8x1xf32> to vector<8x256xf32>
    %13 = arith.addf %11, %12 : vector<8x256xf32>
    %cst_15 = arith.constant 0.000000e+00 : f32
    %14 = vector.broadcast %cst_15 : f32 to vector<8x256xf32>
    %15 = arith.maximumf %13, %14 : vector<8x256xf32>
    %16 = vector.broadcast %3 : vector<8x1xf32> to vector<8x256xf32>
    %17 = arith.mulf %16, %15 : vector<8x256xf32>
    %cst_16 = arith.constant dense<0.000000e+00> : vector<256xf32>
    %18 = vector.multi_reduction <add>, %17, %cst_16 [0] : vector<8x256xf32> to vector<256xf32>
    %19 = vector.shape_cast %18 : vector<256xf32> to vector<1x256xf32>
    %20 = vector.broadcast %4 : f32 to vector<1x256xf32>
    %21 = arith.addf %19, %20 : vector<1x256xf32>
    %22 = arith.negf %21 : vector<1x256xf32>
    %23 = math.exp %22 : vector<1x256xf32>
    %cst_17 = arith.constant 1.000000e+00 : f32
    %24 = vector.broadcast %cst_17 : f32 to vector<1x256xf32>
    %25 = arith.addf %24, %23 : vector<1x256xf32>
    %26 = arith.divf %24, %25 : vector<1x256xf32>
    %27 = vector.broadcast %26 : vector<1x256xf32> to vector<4x256xf32>
    %28 = arith.mulf %8, %27 : vector<4x256xf32>
    %c0_18 = arith.constant 0 : index
    %c0_19 = arith.constant 0 : index
    %c0_20 = arith.constant 0 : index
    %29 = vector.load %arg9[%c0_18, %c0_19, %c0_20] : memref<1x4x256xf32, #tpu.memory_space<vmem>>, vector<1x4x256xf32>
    %30 = vector.shape_cast %29 : vector<1x4x256xf32> to vector<4x256xf32>
    %31 = vector.shape_cast %28 : vector<4x256xf32> to vector<1x4x256xf32>
    tpu.vector_store %arg9[%c0_18, %c0_19, %c0_20], %31 {strides = array<i32>} : memref<1x4x256xf32, #tpu.memory_space<vmem>>, vector<1x4x256xf32>,
    return
  }
  func.func @transform_0(%arg0: i32, %arg1: i32) -> (i32, i32, i32) {
    %c0_i32 = arith.constant 0 : i32
    %c0_i32_0 = arith.constant 0 : i32
    return %arg0, %c0_i32, %arg1 : i32, i32, i32
  }
  func.func @transform_1(%arg0: i32, %arg1: i32) -> (i32, i32, i32) {
    %c0_i32 = arith.constant 0 : i32
    %c0_i32_0 = arith.constant 0 : i32
    return %arg0, %c0_i32, %arg1 : i32, i32, i32
  }
  func.func @transform_2(%arg0: i32, %arg1: i32) -> (i32, i32) {
    %c0_i32 = arith.constant 0 : i32
    %c0_i32_0 = arith.constant 0 : i32
    %c0_i32_1 = arith.constant 0 : i32
    return %c0_i32, %c0_i32_0 : i32, i32
  }
  func.func @transform_3(%arg0: i32, %arg1: i32) -> (i32, i32) {
    %c0_i32 = arith.constant 0 : i32
    %c0_i32_0 = arith.constant 0 : i32
    %c0_i32_1 = arith.constant 0 : i32
    return %c0_i32, %c0_i32_0 : i32, i32
  }
  func.func @transform_4(%arg0: i32, %arg1: i32) -> (i32, i32) {
    %c0_i32 = arith.constant 0 : i32
    %c0_i32_0 = arith.constant 0 : i32
    %c0_i32_1 = arith.constant 0 : i32
    return %c0_i32, %c0_i32_0 : i32, i32
  }
  func.func @transform_5(%arg0: i32, %arg1: i32) -> (i32, i32) {
    %c0_i32 = arith.constant 0 : i32
    %c0_i32_0 = arith.constant 0 : i32
    %c0_i32_1 = arith.constant 0 : i32
    return %c0_i32, %c0_i32_0 : i32, i32
  }
  func.func @transform_6(%arg0: i32, %arg1: i32) -> i32 {
    %c0_i32 = arith.constant 0 : i32
    %c0_i32_0 = arith.constant 0 : i32
    return %c0_i32 : i32
  }
  func.func @transform_7(%arg0: i32, %arg1: i32) -> (i32, i32, i32) {
    %c0_i32 = arith.constant 0 : i32
    %c0_i32_0 = arith.constant 0 : i32
    return %arg0, %c0_i32, %arg1 : i32, i32, i32
  }
}

module attributes {stable_mosaic.version = 11 : i64} {
  func.func @_attention_kernel(%arg0: i32, %arg1: i32, %arg2: memref<1x4x256xf32, #tpu.memory_space<vmem>>, %arg3: memref<1x4x256xf32, #tpu.memory_space<vmem>>, %arg4: memref<8x4xf32, #tpu.memory_space<vmem>>, %arg5: memref<8x4xf32, #tpu.memory_space<vmem>>, %arg6: memref<8x1xf32, #tpu.memory_space<vmem>>, %arg7: memref<8x1xf32, #tpu.memory_space<vmem>>, %arg8: memref<1xf32, #tpu.memory_space<smem>>, %arg9: memref<1x4x256xf32, #tpu.memory_space<vmem>>) attributes {dimension_semantics = [#tpu.dimension_semantics<parallel>, #tpu.dimension_semantics<parallel>], iteration_bounds = array<i64: 2, 1>, scalar_prefetch = 0 : i64, scratch_operands = 0 : i64, tpu.core_type = #tpu.core_type<tc>, window_params = [{transform_indices = @transform_0, window_bounds = array<i64: 1, 4, 256>}, {transform_indices = @transform_1, window_bounds = array<i64: 1, 4, 256>}, {pipeline_mode = #tpu.pipeline_mode<synchronous>, transform_indices = @transform_2, window_bounds = array<i64: 8, 4>}, {pipeline_mode = #tpu.pipeline_mode<synchronous>, transform_indices = @transform_3, window_bounds = array<i64: 8, 4>}, {pipeline_mode = #tpu.pipeline_mode<synchronous>, transform_indices = @transform_4, window_bounds = array<i64: 8, 1>}, {pipeline_mode = #tpu.pipeline_mode<synchronous>, transform_indices = @transform_5, window_bounds = array<i64: 8, 1>}, {transform_indices = @transform_6, window_bounds = array<i64: 1>}, {transform_indices = @transform_7, window_bounds = array<i64: 1, 4, 256>}]} {
    %c0 = arith.constant 0 : index
    %c0_0 = arith.constant 0 : index
    %0 = vector.load %arg4[%c0, %c0_0] : memref<8x4xf32, #tpu.memory_space<vmem>>, vector<8x4xf32>
    %c0_1 = arith.constant 0 : index
    %c0_2 = arith.constant 0 : index
    %1 = vector.load %arg5[%c0_1, %c0_2] : memref<8x4xf32, #tpu.memory_space<vmem>>, vector<8x4xf32>
    %c0_3 = arith.constant 0 : index
    %c0_4 = arith.constant 0 : index
    %2 = vector.load %arg6[%c0_3, %c0_4] : memref<8x1xf32, #tpu.memory_space<vmem>>, vector<8x1xf32>
    %c0_5 = arith.constant 0 : index
    %c0_6 = arith.constant 0 : index
    %3 = vector.load %arg7[%c0_5, %c0_6] : memref<8x1xf32, #tpu.memory_space<vmem>>, vector<8x1xf32>
    %c0_7 = arith.constant 0 : index
    %4 = memref.load %arg8[%c0_7] : memref<1xf32, #tpu.memory_space<smem>>
    %c0_8 = arith.constant 0 : index
    %c0_9 = arith.constant 0 : index
    %c0_10 = arith.constant 0 : index
    %5 = vector.load %arg2[%c0_8, %c0_9, %c0_10] : memref<1x4x256xf32, #tpu.memory_space<vmem>>, vector<1x4x256xf32>
    %6 = vector.shape_cast %5 : vector<1x4x256xf32> to vector<4x256xf32>
    %c0_11 = arith.constant 0 : index
    %c0_12 = arith.constant 0 : index
    %c0_13 = arith.constant 0 : index
    %7 = vector.load %arg3[%c0_11, %c0_12, %c0_13] : memref<1x4x256xf32, #tpu.memory_space<vmem>>, vector<1x4x256xf32>
    %8 = vector.shape_cast %7 : vector<1x4x256xf32> to vector<4x256xf32>
    %cst = arith.constant dense<0.000000e+00> : vector<8x256xf32>
    %9 = tpu.matmul %0, %6, %cst {dimension_numbers = #tpu.dot_dimension_numbers<[1], [0], [0], [1], [0, 0, 1, 1], [], []>} : vector<8x4xf32>, vector<4x256xf32>, vector<8x256xf32> -> vector<8x256xf32>
    %cst_14 = arith.constant dense<0.000000e+00> : vector<8x256xf32>
    %10 = tpu.matmul %1, %8, %cst_14 {dimension_numbers = #tpu.dot_dimension_numbers<[1], [0], [0], [1], [0, 0, 1, 1], [], []>} : vector<8x4xf32>, vector<4x256xf32>, vector<8x256xf32> -> vector<8x256xf32>
    %11 = arith.addf %9, %10 : vector<8x256xf32>
    %12 = vector.broadcast %2 : vector<8x1xf32> to vector<8x256xf32>
    %13 = arith.addf %11, %12 : vector<8x256xf32>
    %cst_15 = arith.constant 0.000000e+00 : f32
    %14 = vector.broadcast %cst_15 : f32 to vector<8x256xf32>
    %15 = arith.maximumf %13, %14 : vector<8x256xf32>
    %16 = vector.broadcast %3 : vector<8x1xf32> to vector<8x256xf32>
    %17 = arith.mulf %16, %15 : vector<8x256xf32>
    %cst_16 = arith.constant dense<0.000000e+00> : vector<256xf32>
    %18 = vector.multi_reduction <add>, %17, %cst_16 [0] : vector<8x256xf32> to vector<256xf32>
    %19 = vector.shape_cast %18 : vector<256xf32> to vector<1x256xf32>
    %20 = vector.broadcast %4 : f32 to vector<1x256xf32>
    %21 = arith.addf %19, %20 : vector<1x256xf32>
    %22 = arith.negf %21 : vector<1x256xf32>
    %23 = math.exp %22 : vector<1x256xf32>
    %cst_17 = arith.constant 1.000000e+00 : f32
    %24 = vector.broadcast %cst_17 : f32 to vector<1x256xf32>
    %25 = arith.addf %24, %23 : vector<1x256xf32>
    %26 = arith.divf %24, %25 : vector<1x256xf32>
    %27 = vector.broadcast %26 : vector<1x256xf32> to vector<4x256xf32>
    %28 = arith.mulf %8, %27 : vector<4x256xf32>
    %c0_18 = arith.constant 0 : index
    %c0_19 = arith.constant 0 : index
    %c0_20 = arith.constant 0 : index
    %29 = vector.load %arg9[%c0_18, %c0_19, %c0_20] : memref<1x4x256xf32, #tpu.memory_space<vmem>>, vector<1x4x256xf32>
    %30 = vector.shape_cast %29 : vector<1x4x256xf32> to vector<4x256xf32>
    %31 = vector.shape_cast %28 : vector<4x256xf32> to vector<1x4x256xf32>
    tpu.vector_store %arg9[%c0_18, %c0_19, %c0_20], %31 {strides = array<i32>} : memref<1x4x256xf32, #tpu.memory_space<vmem>>, vector<1x4x256xf32>,
    return
  }
  func.func @transform_0(%arg0: i32, %arg1: i32) -> (i32, i32, i32) {
    %c0_i32 = arith.constant 0 : i32
    %c0_i32_0 = arith.constant 0 : i32
    return %arg0, %c0_i32, %arg1 : i32, i32, i32
  }
  func.func @transform_1(%arg0: i32, %arg1: i32) -> (i32, i32, i32) {
    %c0_i32 = arith.constant 0 : i32
    %c0_i32_0 = arith.constant 0 : i32
    return %arg0, %c0_i32, %arg1 : i32, i32, i32
  }
  func.func @transform_2(%arg0: i32, %arg1: i32) -> (i32, i32) {
    %c0_i32 = arith.constant 0 : i32
    %c0_i32_0 = arith.constant 0 : i32
    %c0_i32_1 = arith.constant 0 : i32
    return %c0_i32, %c0_i32_0 : i32, i32
  }
  func.func @transform_3(%arg0: i32, %arg1: i32) -> (i32, i32) {
    %c0_i32 = arith.constant 0 : i32
    %c0_i32_0 = arith.constant 0 : i32
    %c0_i32_1 = arith.constant 0 : i32
    return %c0_i32, %c0_i32_0 : i32, i32
  }
  func.func @transform_4(%arg0: i32, %arg1: i32) -> (i32, i32) {
    %c0_i32 = arith.constant 0 : i32
    %c0_i32_0 = arith.constant 0 : i32
    %c0_i32_1 = arith.constant 0 : i32
    return %c0_i32, %c0_i32_0 : i32, i32
  }
  func.func @transform_5(%arg0: i32, %arg1: i32) -> (i32, i32) {
    %c0_i32 = arith.constant 0 : i32
    %c0_i32_0 = arith.constant 0 : i32
    %c0_i32_1 = arith.constant 0 : i32
    return %c0_i32, %c0_i32_0 : i32, i32
  }
  func.func @transform_6(%arg0: i32, %arg1: i32) -> i32 {
    %c0_i32 = arith.constant 0 : i32
    %c0_i32_0 = arith.constant 0 : i32
    return %c0_i32 : i32
  }
  func.func @transform_7(%arg0: i32, %arg1: i32) -> (i32, i32, i32) {
    %c0_i32 = arith.constant 0 : i32
    %c0_i32_0 = arith.constant 0 : i32
    return %arg0, %c0_i32, %arg1 : i32, i32, i32
  }
}

</mosaic_0001>

<bundles_post_ra>
// kernel: tpu_custom_call.1
= control target key start
LH: loop header
LB: loop body
LE: loop exit
PB: predicated region body
PF: predicated region fallthrough
CT: control target
= control target key end

     0   :  { %s996_s0 = inlined_call_operand.vmem [shape: f32[2,4,256], index: 0, kind: input, shape index: {}]   ;;  %s997_s1 = inlined_call_operand.vmem [shape: f32[2,4,256], index: 1, kind: input, shape index: {}]   ;;  %s998_s2 = inlined_call_operand.vmem [shape: f32[8,4], index: 2, kind: input, shape index: {}]   ;;  %s999_s3 = inlined_call_operand.vmem [shape: f32[8,4], index: 3, kind: input, shape index: {}]   ;;  %s1000_s4 = inlined_call_operand.vmem [shape: f32[8,1], index: 4, kind: input, shape index: {}]   ;;  %s1001_s5 = inlined_call_operand.vmem [shape: f32[8,1], index: 5, kind: input, shape index: {}]   ;;  %s1002_s6 = inlined_call_operand.<no memory space> [shape: f32[1], index: 6, kind: input, shape index: {}]   ;;  %s1003_s7 = inlined_call_operand.hbm [shape: f32[2,4,256], index: 7, kind: output, shape index: {}]  }
   0x1   :  { %12 = sst [smem:[#allocation2]] %s1002_s6 }
   0x2   :  { %13 = vsyncpa [#allocation4], 0 }
   0x3   :  { %15 = vsyncpa [#allocation4 + $0x1], 0  ;;  %s862_s26 = smov 0   ;;  %s864_s27 = smov 0  }
   0x4   :  { %s866_s28 = smov 0   ;;  %s868_s29 = smov 0  }
   0x5   :  { %s870_s30 = smov 0   ;;  %s872_s8 = smov 0  }
   0x6 LB: > { %s645_s6 = sadd.s32 4294967295, %s816_s8   ;;  %s646_s9 = sadd.s32 4294967294, %s816_s8   ;;  %s816_s8 = sphi %s872_s8, %s21_s8   ;;  %s812_s30 = sphi %s870_s30, %s1012_s30   ;;  %s808_s29 = sphi %s868_s29, %s1011_s29   ;;  %s804_s28 = sphi %s866_s28, %s1010_s28   ;;  %s800_s27 = sphi %s864_s27, %s1009_s27   ;;  %s796_s26 = sphi %s862_s26, %s1008_s26  }
   0x7   : > { %s33_s10 = sadd.s32 1, %s812_s30  ;;  %s203_s11 = sadd.s32 1, %s804_s28 }
   0x8   : > { %p35_p0 = scmp.ge.s32.totalorder %s33_s10, 2  ;;  %p213_p1 = scmp.ne.s32.totalorder %s804_s28, %s800_s27 }
   0x9   : > { %p214_p2 = scmp.eq.s32.totalorder %s645_s6, 1  ;;  %p219_p3 = scmp.ne.s32.totalorder %s800_s27, %s796_s26 }
   0xa   : > { %s1014_s10 = smov (%p35_p0, %s33_s10), 0  ;;  %p220_p5 = scmp.eq.s32.totalorder %s646_s9, 1 }
   0xb   : > { %p902_p4 = por %p214_p2, %p213_p1  ;;  %s198_s13 = ssub.s32 %s812_s30, %s1014_s10 }
   0xc   : > { %p649_p6 = scmp.ge.s32.totalorder %s816_s8, 1  ;;  %p201_p7 = scmp.eq.s32.totalorder %s198_s13, 0 }
   0xd   : > { %p909_p8 = por %p220_p5, %p219_p3  ;;  %p279_p9 = scmp.lt.s32.totalorder %s816_s8, 3 }
   0xe   : > { %s915_s15 = scalar_select %p201_p7, %s804_s28, %s203_s11  }
   0xf   : > { %p280_p10 = pnand %p649_p6, %p279_p9 }
  0x10   : > { %p325_p11 = scmp.lt.s32.totalorder (!%p280_p10), %s808_s29, 1  ;;  %s672_s21 = sshll.u32 (!%p280_p10), %s808_s29, 3 }
  0x11   : > { %283 = sbr.rel (%p280_p10) target bundleno = 235 (0xeb), region = 48  ;;  %s546_s24 = scalar_lea.hbm (!%p280_p10), %s1003_s7, %s672_s21 }
  0x12   : > { %s550_s6 = sshll.u32 (!%p280_p10), %s546_s24, 4  ;;  %s551_s6 = int_to_ptr.hbm [resolvable:$true] %s550_s6 }
  0x13   : > { %s752_s11 = sshra.s32 (!%p280_p10), %s551_s6, 4  ;;  %s753_s11 = int_to_ptr.hbm [resolvable:$true] %s752_s11 }
  0x14   : > { %s754_s13 = scalar_lea.hbm (!%p280_p10), %s753_s11, 8  ;;  %p759_p1 = scmp.lt.s32.totalorder (!%p280_p10), %s753_s11, %s1003_s7 }
  0x15   : > { %p755_p12 = scmp.ne.s32.totalorder (!%p280_p10), %s753_s11, %s754_s13 }
  0x16   : > { %v818_v0 = vmov 0   ;;  %v347_v1 = vld [vmem:[%s1000_s4] sm:$0xff]  ;;  %s326_s18 = scalar_select %p325_p11, %s808_s29, 1  ;;  %vm360_vm0 = vcmask 1043456   ;;  %vm356_vm1 = vcmask 31744  }
  0x17   : > { %729 = vset.pattern.permute.xlu0 %v818_v0  ;;  %v348_v3 = vld [vmem:[%s1001_s5] sm:$0xff]  ;;  %p756_p13 = pnand %p755_p12, %p902_p4 }
  0x18   : > { %458 = vperm.xlu0 %729, %v347_v1   ;;  %s670_s19 = sshll.u32 %s326_s18, 3  ;;  %v346_v5 = vld [vmem:[%s999_s3] sm:$0xff]  ;;  %s349_s18 = sld [smem:[#allocation2]] }
  0x19   : > { %s342_s22 = scalar_lea.vmem %s997_s1, %s670_s19  ;;  %s332_s9 = scalar_lea.vmem %s996_s0, %s670_s19  ;;  %v345_v8 = vld [vmem:[%s998_s2] sm:$0xff] }
  0x1a   : > { %v925_v2 = vld [vmem:[%s342_s22] sm:$0xff]  ;;  %s321_s19 = sand.u32 1, %s800_s27   ;;  %p757_p0 = pneg %p756_p13 }
  0x1b   : > { %353 = vst [vmem:[#allocation1] ss:$2 sm:$0xff] %v925_v2  ;;  %v350_v4 = vld [vmem:[%s332_s9] sm:$0xff]  ;;  %s947_s20 = sshll.u32 %s321_s19, 3  ;;  %s533_s9 = scalar_lea.sflag [#allocation4], %s321_s19 }
  0x1c   : > { %s323_s29 = scalar_lea.vmem [#allocation3], %s947_s20 }
  0x1d   : > { %s548_s25 = sshll.u32 %s323_s29, 4  ;;  %s549_s25 = int_to_ptr.vmem [resolvable:$true] %s548_s25 }
  0x1e   : > { %v484_v35 = vstv %s349_s18  ;;  %s758_s18 = scalar_lea.hbm %s1003_s7, 16 }
  0x1f   : > { %p760_p2 = scmp.lt.s32.totalorder %s758_s18, %s754_s13 }
  0x20   : > { %467 = vperm.xlu0 %729, %v348_v3  }
  0x21   : > { %p761_p3 = por %p760_p2, %p759_p1 }
  0x22   : > { %v354_v6 = vld.sshfl [vmem:[#allocation1] sm:$0xff pattern:$0x75316420]  ;;  %v355_v7 = vld.sshfl [vmem:[#allocation1 + $0x8] sm:$0xff pattern:$0x75316420] }
  0x23   : > { %406 = vst [vmem:[#allocation1] ss:$2 sm:$0xff] %v350_v4  ;;  %655 = vmatpush.msk.msra.mxu0 %vm360_vm0, %v354_v6  ;;  %657 = vmatpush.msk.msra.mxu1 %vm360_vm0, %v355_v7  ;;  %p762_p5 = pnand %p761_p3, %p757_p0 }
  0x24   : > { %656 = vmatmul.msk.f32.vlgmr.msra.gmra.mxu0 %vm356_vm1, %v346_v5  ;;  %658 = vmatmul.msk.f32.vlgmr.msra.gmra.mxu1 %vm356_vm1, %v346_v5 }
  0x2a   : > { %v407_v9 = vld.sshfl [vmem:[#allocation1] sm:$0xff pattern:$0x75316420]  ;;  %v408_v10 = vld.sshfl [vmem:[#allocation1 + $0x8] sm:$0xff pattern:$0x75316420] }
  0x2b   : > { %659 = vmatpush.msk.msra.mxu2 %vm360_vm0, %v407_v9  ;;  %661 = vmatpush.msk.msra.mxu3 %vm360_vm0, %v408_v10 }
  0x2c   : > { %660 = vmatmul.msk.f32.vlgmr.msra.gmra.mxu2 %vm356_vm1, %v345_v8  ;;  %662 = vmatmul.msk.f32.vlgmr.msra.gmra.mxu3 %vm356_vm1, %v345_v8 }
  0x8a   : > { %v459_v11 = vpop.permute.xlu0 %458 }
  0x92   : > { %v468_v22 = vpop.permute.xlu0 %467 }
  0xa1   : > { %v382_v12 = vpop.f32.mrf.mxu0  ;;  %v402_v13 = vpop.f32.mrf.mxu1 }
  0xaf   : > { %v433_v14 = vpop.f32.mrf.mxu2  ;;  %v453_v15 = vpop.f32.mrf.mxu3 }
  0xb0   : > { %v434_v16 = vadd.f32 %v433_v14, %v382_v12  ;;  %v454_v17 = vadd.f32 %v453_v15, %v402_v13 }
  0xb2   : > { %v461_v18 = vadd.f32 %v459_v11, %v434_v16  ;;  %v462_v19 = vadd.f32 %v459_v11, %v454_v17 }
  0xb4   : > { %v463_v20 = vmax.f32 %v461_v18, 0.0  ;;  %v464_v21 = vmax.f32 %v462_v19, 0.0 }
  0xb6   : > { %v470_v23 = vmul.f32 %v468_v22, %v463_v20  ;;  %v471_v24 = vmul.f32 %v468_v22, %v464_v21 }
  0xb8   : > { %v472_v25 = vrot.slane %v470_v23, 4  ;;  %v478_v26 = vrot.slane %v471_v24, 4 }
  0xba   : > { %v473_v27 = vadd.f32 %v472_v25, %v470_v23  ;;  %v479_v28 = vadd.f32 %v478_v26, %v471_v24 }
  0xbc   : > { %v474_v29 = vrot.slane %v473_v27, 2  ;;  %v480_v30 = vrot.slane %v479_v28, 2 }
  0xbe   : > { %v475_v31 = vadd.f32 %v474_v29, %v473_v27  ;;  %v481_v32 = vadd.f32 %v480_v30, %v479_v28 }
  0xc0   : > { %v476_v33 = vrot.slane %v475_v31, 1  ;;  %v482_v34 = vrot.slane %v481_v32, 1 }
  0xc2   : > { %v477_v36 = vadd.f32 %v476_v33, %v475_v31  ;;  %v483_v37 = vadd.f32 %v482_v34, %v481_v32 }
  0xc4   : > { %v485_v38 = vadd.f32 %v484_v35, %v477_v36  ;;  %v486_v39 = vadd.f32 %v484_v35, %v483_v37 }
  0xc6   : > { %v663_v40 = vmul.f32 -1.442695, %v485_v38  ;;  %v664_v41 = vmul.f32 -1.442695, %v486_v39 }
  0xc8   : > { %730 = vpow2.f32 %v663_v40 }
  0xc9   : > { %732 = vpow2.f32 %v664_v41 }
  0xce   : > { %v731_v42 = vpop.eup %730 }
  0xcf   : > { %v733_v43 = vpop.eup %732  ;;  %v493_v44 = vadd.f32 1.0, %v731_v42 }
  0xd0   : > { %v494_v45 = vadd.f32 1.0, %v733_v43 }
  0xd1   : > { %734 = vrcp.f32 %v493_v44  ;;  %vm500_vm4 = vweird.f32 %v493_v44  ;;  %v506_v57 = vand.u32 2147483648, %v493_v44  ;;  %v504_v59 = vand.u32 2147483647, %v493_v44 }
  0xd2   : > { %736 = vrcp.f32 %v494_v45  ;;  %v521_v53 = vand.u32 2147483648, %v494_v45  ;;  %v519_v55 = vand.u32 2147483647, %v494_v45  ;;  %vm515_vm6 = vweird.f32 %v494_v45 }
  0xd3   : > { %v507_v0 = vor.u32 1.1754944e-38, %v506_v57  ;;  %vm505_vm9 = vcmp.eq.f32.partialorder %v504_v59, 8.507059e+37 }
  0xd4   : > { %v522_v61 = vor.u32 1.1754944e-38, %v521_v53  ;;  %vm520_vm8 = vcmp.eq.f32.partialorder %v519_v55, 8.507059e+37 }
  0xd7   : > { %v735_v46 = vpop.eup %734 }
  0xd8   : > { %v737_v47 = vpop.eup %736  ;;  %v496_v48 = vmul.f32 %v735_v46, %v493_v44  ;;  %vm501_vm2 = vweird.f32 %v735_v46 }
  0xd9   : > { %v511_v49 = vmul.f32 %v737_v47, %v494_v45  ;;  %vm516_vm3 = vweird.f32 %v737_v47  ;;  %vm950_vm5 = vmor %vm500_vm4, %vm501_vm2 }
  0xda   : > { %v497_v50 = vsub.f32 1.0, %v496_v48  ;;  %vm517_vm7 = vmor %vm515_vm6, %vm516_vm3 }
  0xdb   : > { %v512_v51 = vsub.f32 1.0, %v511_v49 }
  0xdc   : > { %v498_v52 = vmul.f32 %v735_v46, %v497_v50 }
  0xdd   : > { %v513_v54 = vmul.f32 %v737_v47, %v512_v51 }
  0xde   : > { %v499_v56 = vadd.f32 %v735_v46, %v498_v52 }
  0xdf   : > { %v514_v60 = vadd.f32 %v737_v47, %v513_v54 }
  0xe0   : > { %v503_v62 = vsel %vm950_vm5, %v735_v46, %v499_v56 }
  0xe1   : > { %v518_v63 = vsel %vm517_vm7, %v737_v47, %v514_v60  ;;  %v508_v4 = vsel %vm505_vm9, %v507_v0, %v503_v62 }
  0xe2   : > { %v523_v1 = vsel %vm520_vm8, %v522_v61, %v518_v63 }
  0xe3   : > { %v527_v3 = vrot.slane %v523_v1, 4 }
  0xe5   : > { %v528_v5 = vsel %vm360_vm0, %v508_v4, %v527_v3 }
  0xe6   : > { %v530_v6 = vmul.f32 %v528_v5, %v925_v2 }
  0xe8   : > { %531 = vst [vmem:[%s323_s29] sm:$0xff] %v530_v6 }
  0xe9   : > { %765 = shalt.err (!%p762_p5)
}
  0xea   : > { %673 = dma.vmem_to_hbm [thread:$0]  (%p902_p4), %s549_s25, 128, %s551_s6, %s533_s9  }
  0xeb PF: > { %p679_p6 = scmp.ge.s32.totalorder %s816_s8, 2  ;;  %s562_s19 = sand.u32 1, %s796_s26  }
  0xec   : > { %s563_s22 = scalar_lea.sflag [#allocation4], %s562_s19 }
  0xed   : > { %p676_p7 = pnand %p679_p6, %p909_p8 }
  0xef   : > { %p677_p9 = pneg %p676_p7 }
  0xf1   : > { %791 = dma.done.wait (%p677_p9), %s563_s22, 128  }
  0xf2   : > { %793 = vsyncadd (%p677_p9), %s563_s22, 4294967168  ;;  %s21_s8 = sadd.s32 1, %s816_s8   ;;  %s1008_s26 = smov %s800_s27 }
  0xf3   : > { %p18_p10 = scmp.ge.s32.totalorder %s21_s8, 4   ;;  %s1009_s27 = smov %s804_s28 }
  0xf4   : > { %s1010_s28 = smov %s915_s15  ;;  %s1011_s29 = smov %s812_s30 }
  0xf5   : > { %s1012_s30 = smov %s1014_s10  ;;  %20 = sbr.rel (!%p18_p10) target bundleno = 6 (0x6), region = 86 }
  0xfa   :  { %569 = vsyncpa [#allocation4], 1 }
  0xfb   :  { %571 = vsyncpa [#allocation4 + $0x1], 1 }

// kernel: tpu_custom_call.1
= control target key start
LH: loop header
LB: loop body
LE: loop exit
PB: predicated region body
PF: predicated region fallthrough
CT: control target
= control target key end

     0   :  { %s996_s0 = inlined_call_operand.vmem [shape: f32[2,4,256], index: 0, kind: input, shape index: {}]   ;;  %s997_s1 = inlined_call_operand.vmem [shape: f32[2,4,256], index: 1, kind: input, shape index: {}]   ;;  %s998_s2 = inlined_call_operand.vmem [shape: f32[8,4], index: 2, kind: input, shape index: {}]   ;;  %s999_s3 = inlined_call_operand.vmem [shape: f32[8,4], index: 3, kind: input, shape index: {}]   ;;  %s1000_s4 = inlined_call_operand.vmem [shape: f32[8,1], index: 4, kind: input, shape index: {}]   ;;  %s1001_s5 = inlined_call_operand.vmem [shape: f32[8,1], index: 5, kind: input, shape index: {}]   ;;  %s1002_s6 = inlined_call_operand.<no memory space> [shape: f32[1], index: 6, kind: input, shape index: {}]   ;;  %s1003_s7 = inlined_call_operand.hbm [shape: f32[2,4,256], index: 7, kind: output, shape index: {}]  }
   0x1   :  { %12 = sst [smem:[#allocation2]] %s1002_s6 }
   0x2   :  { %13 = vsyncpa [#allocation4], 0 }
   0x3   :  { %15 = vsyncpa [#allocation4 + $0x1], 0  ;;  %s862_s26 = smov 0   ;;  %s864_s27 = smov 0  }
   0x4   :  { %s866_s28 = smov 0   ;;  %s868_s29 = smov 0  }
   0x5   :  { %s870_s30 = smov 0   ;;  %s872_s8 = smov 0  }
   0x6 LB: > { %s645_s6 = sadd.s32 4294967295, %s816_s8   ;;  %s646_s9 = sadd.s32 4294967294, %s816_s8   ;;  %s816_s8 = sphi %s872_s8, %s21_s8   ;;  %s812_s30 = sphi %s870_s30, %s1012_s30   ;;  %s808_s29 = sphi %s868_s29, %s1011_s29   ;;  %s804_s28 = sphi %s866_s28, %s1010_s28   ;;  %s800_s27 = sphi %s864_s27, %s1009_s27   ;;  %s796_s26 = sphi %s862_s26, %s1008_s26  }
   0x7   : > { %s33_s10 = sadd.s32 1, %s812_s30  ;;  %s203_s11 = sadd.s32 1, %s804_s28 }
   0x8   : > { %p35_p0 = scmp.ge.s32.totalorder %s33_s10, 2  ;;  %p213_p1 = scmp.ne.s32.totalorder %s804_s28, %s800_s27 }
   0x9   : > { %p214_p2 = scmp.eq.s32.totalorder %s645_s6, 1  ;;  %p219_p3 = scmp.ne.s32.totalorder %s800_s27, %s796_s26 }
   0xa   : > { %s1014_s10 = smov (%p35_p0, %s33_s10), 0  ;;  %p220_p5 = scmp.eq.s32.totalorder %s646_s9, 1 }
   0xb   : > { %p902_p4 = por %p214_p2, %p213_p1  ;;  %s198_s13 = ssub.s32 %s812_s30, %s1014_s10 }
   0xc   : > { %p649_p6 = scmp.ge.s32.totalorder %s816_s8, 1  ;;  %p201_p7 = scmp.eq.s32.totalorder %s198_s13, 0 }
   0xd   : > { %p909_p8 = por %p220_p5, %p219_p3  ;;  %p279_p9 = scmp.lt.s32.totalorder %s816_s8, 3 }
   0xe   : > { %s915_s15 = scalar_select %p201_p7, %s804_s28, %s203_s11  }
   0xf   : > { %p280_p10 = pnand %p649_p6, %p279_p9 }
  0x10   : > { %p325_p11 = scmp.lt.s32.totalorder (!%p280_p10), %s808_s29, 1  ;;  %s672_s21 = sshll.u32 (!%p280_p10), %s808_s29, 3 }
  0x11   : > { %283 = sbr.rel (%p280_p10) target bundleno = 235 (0xeb), region = 48  ;;  %s546_s24 = scalar_lea.hbm (!%p280_p10), %s1003_s7, %s672_s21 }
  0x12   : > { %s550_s6 = sshll.u32 (!%p280_p10), %s546_s24, 4  ;;  %s551_s6 = int_to_ptr.hbm [resolvable:$true] %s550_s6 }
  0x13   : > { %s752_s11 = sshra.s32 (!%p280_p10), %s551_s6, 4  ;;  %s753_s11 = int_to_ptr.hbm [resolvable:$true] %s752_s11 }
  0x14   : > { %s754_s13 = scalar_lea.hbm (!%p280_p10), %s753_s11, 8  ;;  %p759_p1 = scmp.lt.s32.totalorder (!%p280_p10), %s753_s11, %s1003_s7 }
  0x15   : > { %p755_p12 = scmp.ne.s32.totalorder (!%p280_p10), %s753_s11, %s754_s13 }
  0x16   : > { %v818_v0 = vmov 0   ;;  %v347_v1 = vld [vmem:[%s1000_s4] sm:$0xff]  ;;  %s326_s18 = scalar_select %p325_p11, %s808_s29, 1  ;;  %vm360_vm0 = vcmask 1043456   ;;  %vm356_vm1 = vcmask 31744  }
  0x17   : > { %729 = vset.pattern.permute.xlu0 %v818_v0  ;;  %v348_v3 = vld [vmem:[%s1001_s5] sm:$0xff]  ;;  %p756_p13 = pnand %p755_p12, %p902_p4 }
  0x18   : > { %458 = vperm.xlu0 %729, %v347_v1   ;;  %s670_s19 = sshll.u32 %s326_s18, 3  ;;  %v346_v5 = vld [vmem:[%s999_s3] sm:$0xff]  ;;  %s349_s18 = sld [smem:[#allocation2]] }
  0x19   : > { %s342_s22 = scalar_lea.vmem %s997_s1, %s670_s19  ;;  %s332_s9 = scalar_lea.vmem %s996_s0, %s670_s19  ;;  %v345_v8 = vld [vmem:[%s998_s2] sm:$0xff] }
  0x1a   : > { %v925_v2 = vld [vmem:[%s342_s22] sm:$0xff]  ;;  %s321_s19 = sand.u32 1, %s800_s27   ;;  %p757_p0 = pneg %p756_p13 }
  0x1b   : > { %353 = vst [vmem:[#allocation1] ss:$2 sm:$0xff] %v925_v2  ;;  %v350_v4 = vld [vmem:[%s332_s9] sm:$0xff]  ;;  %s947_s20 = sshll.u32 %s321_s19, 3  ;;  %s533_s9 = scalar_lea.sflag [#allocation4], %s321_s19 }
  0x1c   : > { %s323_s29 = scalar_lea.vmem [#allocation3], %s947_s20 }
  0x1d   : > { %s548_s25 = sshll.u32 %s323_s29, 4  ;;  %s549_s25 = int_to_ptr.vmem [resolvable:$true] %s548_s25 }
  0x1e   : > { %v484_v35 = vstv %s349_s18  ;;  %s758_s18 = scalar_lea.hbm %s1003_s7, 16 }
  0x1f   : > { %p760_p2 = scmp.lt.s32.totalorder %s758_s18, %s754_s13 }
  0x20   : > { %467 = vperm.xlu0 %729, %v348_v3  }
  0x21   : > { %p761_p3 = por %p760_p2, %p759_p1 }
  0x22   : > { %v354_v6 = vld.sshfl [vmem:[#allocation1] sm:$0xff pattern:$0x75316420]  ;;  %v355_v7 = vld.sshfl [vmem:[#allocation1 + $0x8] sm:$0xff pattern:$0x75316420] }
  0x23   : > { %406 = vst [vmem:[#allocation1] ss:$2 sm:$0xff] %v350_v4  ;;  %655 = vmatpush.msk.msra.mxu0 %vm360_vm0, %v354_v6  ;;  %657 = vmatpush.msk.msra.mxu1 %vm360_vm0, %v355_v7  ;;  %p762_p5 = pnand %p761_p3, %p757_p0 }
  0x24   : > { %656 = vmatmul.msk.f32.vlgmr.msra.gmra.mxu0 %vm356_vm1, %v346_v5  ;;  %658 = vmatmul.msk.f32.vlgmr.msra.gmra.mxu1 %vm356_vm1, %v346_v5 }
  0x2a   : > { %v407_v9 = vld.sshfl [vmem:[#allocation1] sm:$0xff pattern:$0x75316420]  ;;  %v408_v10 = vld.sshfl [vmem:[#allocation1 + $0x8] sm:$0xff pattern:$0x75316420] }
  0x2b   : > { %659 = vmatpush.msk.msra.mxu2 %vm360_vm0, %v407_v9  ;;  %661 = vmatpush.msk.msra.mxu3 %vm360_vm0, %v408_v10 }
  0x2c   : > { %660 = vmatmul.msk.f32.vlgmr.msra.gmra.mxu2 %vm356_vm1, %v345_v8  ;;  %662 = vmatmul.msk.f32.vlgmr.msra.gmra.mxu3 %vm356_vm1, %v345_v8 }
  0x8a   : > { %v459_v11 = vpop.permute.xlu0 %458 }
  0x92   : > { %v468_v22 = vpop.permute.xlu0 %467 }
  0xa1   : > { %v382_v12 = vpop.f32.mrf.mxu0  ;;  %v402_v13 = vpop.f32.mrf.mxu1 }
  0xaf   : > { %v433_v14 = vpop.f32.mrf.mxu2  ;;  %v453_v15 = vpop.f32.mrf.mxu3 }
  0xb0   : > { %v434_v16 = vadd.f32 %v433_v14, %v382_v12  ;;  %v454_v17 = vadd.f32 %v453_v15, %v402_v13 }
  0xb2   : > { %v461_v18 = vadd.f32 %v459_v11, %v434_v16  ;;  %v462_v19 = vadd.f32 %v459_v11, %v454_v17 }
  0xb4   : > { %v463_v20 = vmax.f32 %v461_v18, 0.0  ;;  %v464_v21 = vmax.f32 %v462_v19, 0.0 }
  0xb6   : > { %v470_v23 = vmul.f32 %v468_v22, %v463_v20  ;;  %v471_v24 = vmul.f32 %v468_v22, %v464_v21 }
  0xb8   : > { %v472_v25 = vrot.slane %v470_v23, 4  ;;  %v478_v26 = vrot.slane %v471_v24, 4 }
  0xba   : > { %v473_v27 = vadd.f32 %v472_v25, %v470_v23  ;;  %v479_v28 = vadd.f32 %v478_v26, %v471_v24 }
  0xbc   : > { %v474_v29 = vrot.slane %v473_v27, 2  ;;  %v480_v30 = vrot.slane %v479_v28, 2 }
  0xbe   : > { %v475_v31 = vadd.f32 %v474_v29, %v473_v27  ;;  %v481_v32 = vadd.f32 %v480_v30, %v479_v28 }
  0xc0   : > { %v476_v33 = vrot.slane %v475_v31, 1  ;;  %v482_v34 = vrot.slane %v481_v32, 1 }
  0xc2   : > { %v477_v36 = vadd.f32 %v476_v33, %v475_v31  ;;  %v483_v37 = vadd.f32 %v482_v34, %v481_v32 }
  0xc4   : > { %v485_v38 = vadd.f32 %v484_v35, %v477_v36  ;;  %v486_v39 = vadd.f32 %v484_v35, %v483_v37 }
  0xc6   : > { %v663_v40 = vmul.f32 -1.442695, %v485_v38  ;;  %v664_v41 = vmul.f32 -1.442695, %v486_v39 }
  0xc8   : > { %730 = vpow2.f32 %v663_v40 }
  0xc9   : > { %732 = vpow2.f32 %v664_v41 }
  0xce   : > { %v731_v42 = vpop.eup %730 }
  0xcf   : > { %v733_v43 = vpop.eup %732  ;;  %v493_v44 = vadd.f32 1.0, %v731_v42 }
  0xd0   : > { %v494_v45 = vadd.f32 1.0, %v733_v43 }
  0xd1   : > { %734 = vrcp.f32 %v493_v44  ;;  %vm500_vm4 = vweird.f32 %v493_v44  ;;  %v506_v57 = vand.u32 2147483648, %v493_v44  ;;  %v504_v59 = vand.u32 2147483647, %v493_v44 }
  0xd2   : > { %736 = vrcp.f32 %v494_v45  ;;  %v521_v53 = vand.u32 2147483648, %v494_v45  ;;  %v519_v55 = vand.u32 2147483647, %v494_v45  ;;  %vm515_vm6 = vweird.f32 %v494_v45 }
  0xd3   : > { %v507_v0 = vor.u32 1.1754944e-38, %v506_v57  ;;  %vm505_vm9 = vcmp.eq.f32.partialorder %v504_v59, 8.507059e+37 }
  0xd4   : > { %v522_v61 = vor.u32 1.1754944e-38, %v521_v53  ;;  %vm520_vm8 = vcmp.eq.f32.partialorder %v519_v55, 8.507059e+37 }
  0xd7   : > { %v735_v46 = vpop.eup %734 }
  0xd8   : > { %v737_v47 = vpop.eup %736  ;;  %v496_v48 = vmul.f32 %v735_v46, %v493_v44  ;;  %vm501_vm2 = vweird.f32 %v735_v46 }
  0xd9   : > { %v511_v49 = vmul.f32 %v737_v47, %v494_v45  ;;  %vm516_vm3 = vweird.f32 %v737_v47  ;;  %vm950_vm5 = vmor %vm500_vm4, %vm501_vm2 }
  0xda   : > { %v497_v50 = vsub.f32 1.0, %v496_v48  ;;  %vm517_vm7 = vmor %vm515_vm6, %vm516_vm3 }
  0xdb   : > { %v512_v51 = vsub.f32 1.0, %v511_v49 }
  0xdc   : > { %v498_v52 = vmul.f32 %v735_v46, %v497_v50 }
  0xdd   : > { %v513_v54 = vmul.f32 %v737_v47, %v512_v51 }
  0xde   : > { %v499_v56 = vadd.f32 %v735_v46, %v498_v52 }
  0xdf   : > { %v514_v60 = vadd.f32 %v737_v47, %v513_v54 }
  0xe0   : > { %v503_v62 = vsel %vm950_vm5, %v735_v46, %v499_v56 }
  0xe1   : > { %v518_v63 = vsel %vm517_vm7, %v737_v47, %v514_v60  ;;  %v508_v4 = vsel %vm505_vm9, %v507_v0, %v503_v62 }
  0xe2   : > { %v523_v1 = vsel %vm520_vm8, %v522_v61, %v518_v63 }
  0xe3   : > { %v527_v3 = vrot.slane %v523_v1, 4 }
  0xe5   : > { %v528_v5 = vsel %vm360_vm0, %v508_v4, %v527_v3 }
  0xe6   : > { %v530_v6 = vmul.f32 %v528_v5, %v925_v2 }
  0xe8   : > { %531 = vst [vmem:[%s323_s29] sm:$0xff] %v530_v6 }
  0xe9   : > { %765 = shalt.err (!%p762_p5)
}
  0xea   : > { %673 = dma.vmem_to_hbm [thread:$0]  (%p902_p4), %s549_s25, 128, %s551_s6, %s533_s9  }
  0xeb PF: > { %p679_p6 = scmp.ge.s32.totalorder %s816_s8, 2  ;;  %s562_s19 = sand.u32 1, %s796_s26  }
  0xec   : > { %s563_s22 = scalar_lea.sflag [#allocation4], %s562_s19 }
  0xed   : > { %p676_p7 = pnand %p679_p6, %p909_p8 }
  0xef   : > { %p677_p9 = pneg %p676_p7 }
  0xf1   : > { %791 = dma.done.wait (%p677_p9), %s563_s22, 128  }
  0xf2   : > { %793 = vsyncadd (%p677_p9), %s563_s22, 4294967168  ;;  %s21_s8 = sadd.s32 1, %s816_s8   ;;  %s1008_s26 = smov %s800_s27 }
  0xf3   : > { %p18_p10 = scmp.ge.s32.totalorder %s21_s8, 4   ;;  %s1009_s27 = smov %s804_s28 }
  0xf4   : > { %s1010_s28 = smov %s915_s15  ;;  %s1011_s29 = smov %s812_s30 }
  0xf5   : > { %s1012_s30 = smov %s1014_s10  ;;  %20 = sbr.rel (!%p18_p10) target bundleno = 6 (0x6), region = 86 }
  0xfa   :  { %569 = vsyncpa [#allocation4], 1 }
  0xfb   :  { %571 = vsyncpa [#allocation4 + $0x1], 1 }

</bundles_post_ra>
